<compile_context>
chip_gen: v7x
topology: tpu7x:2x2x1
jax: 0.10.0
libtpu: 0.0.40
codegen_flags: <defaults>
</compile_context>

<pallas_src>
import functools

import jax
import jax.numpy as jnp
from jax.experimental import pallas as pl
from jax.experimental.pallas import tpu as pltpu


def _round_up(v, m):
    return (v + m - 1) // m * m


def _vmem_budget_bytes():
    """Chip-aware scoped-VMEM budget with headroom for compiler scratch."""
    cap = 64 << 20  # conservative default (v7x physical VMEM per TensorCore)
    try:
        info = pltpu.get_tpu_info()
        cap = int(getattr(info, "vmem_capacity_bytes", cap))
    except Exception:
        pass
    # Leave ~8 MiB headroom; never request more than ~100 MiB even on 128 MiB
    # chips (v5e/v6e), never less than 24 MiB.
    return max(24 << 20, min(cap - (8 << 20), 100 << 20))


def _normalize_p2_kernel(x_ref, o_ref):
    # power == 2 fast path:
    #  - sum of squares with f32 accumulation (VPU mul + XLU cross-lane reduce)
    #  - one rsqrt per row on the EUP (tile_n ops, not N*D)
    #  - scaling multiply in f32 and a single cast to the output dtype (HBM
    #    store traffic is unchanged; avoids quantizing 1/||x|| to bf16).
    xf = x_ref[...].astype(jnp.float32)
    s = jnp.sum(xf * xf, axis=1, keepdims=True)        # (tile_n, 1) f32
    inv = jax.lax.rsqrt(s)                             # 1 / ||x||_2 per row
    o_ref[...] = (xf * inv).astype(o_ref.dtype)


def _normalize_pow_kernel(x_ref, o_ref, *, power):
    # Generic power path: matches x.pow(p).sum(1, keepdim=True).pow(1/p); x/norm.
    # Small integer powers use repeated VPU multiplies (hidden under DMA);
    # the inverse norm is computed per ROW (tile_n EUP ops) and applied with a
    # lane-wide multiply, instead of a per-element pow + divide.
    xf = x_ref[...].astype(jnp.float32)
    p_int = int(power) if float(power).is_integer() else None
    if p_int is not None and 1 <= p_int <= 4:
        xp = xf
        for _ in range(p_int - 1):
            xp = xp * xf
    else:
        xp = jnp.power(xf, power)
    s = jnp.sum(xp, axis=1, keepdims=True)              # (tile_n, 1) f32
    inv = jnp.power(s, -1.0 / power)                    # 1 / ||x||_p per row
    o_ref[...] = (xf * inv).astype(o_ref.dtype)


def normalize(x, power=2, block_bytes=None):
    """Pallas equivalent of Normalize(power).forward(x) for 2-D x of shape (N, D)."""
    n, d = x.shape
    itemsize = jnp.dtype(x.dtype).itemsize
    # Sublane packing for the dtype: 8 (f32), 16 (bf16), 32 (int8) so row blocks
    # stay un-masked, lane/sublane dense.
    pack = max(8, 32 // max(itemsize, 1))

    vmem_limit = _vmem_budget_bytes()
    if block_bytes is None:
        # ~8 MiB blocks on v7x (64 MiB VMEM, 3.2 TB/s), ~16 MiB on v5e/v6e.
        block_bytes = (8 << 20) if vmem_limit <= (64 << 20) else (16 << 20)

    # Per-row VMEM cost: double-buffered input + output blocks plus ~3 f32-wide
    # temporaries inside the kernel body.
    per_row_bytes = d * (4 * itemsize + 3 * 4)
    headroom = 2 << 20

    if pack * per_row_bytes + headroom > vmem_limit:
        # TODO(synk): for very wide D add a second "arbitrary" grid axis over D
        # with a (tile_n, 1) f32 sum-of-squares scratch (pl.when init/finalize)
        # plus a rescale pass, instead of refusing the shape.
        raise ValueError(
            f"normalize: feature dim D={d} too wide for a single row block "
            f"within the {vmem_limit >> 20} MiB VMEM budget.")

    rows_vmem = max(pack, (vmem_limit - headroom) // per_row_bytes // pack * pack)
    rows_block = max(pack, block_bytes // max(d * itemsize, 1) // pack * pack)
    rows_budget = min(rows_vmem, rows_block)

    # Largest useful tile: never more rows than (padded) N ...
    tile_n = min(rows_budget, _round_up(n, pack))
    # ... and keep at least 2 grid steps so the "parallel" axis can be sharded
    # across both v7x TensorCores (harmless on single-TC v5e/v6e).
    if n > pack:
        tile_n = min(tile_n, max(pack, _round_up(pl.cdiv(n, 2), pack)))

    grid = (pl.cdiv(n, tile_n),)

    if power == 2:
        kernel = _normalize_p2_kernel
    else:
        kernel = functools.partial(_normalize_pow_kernel, power=power)

    return pl.pallas_call(
        kernel,
        out_shape=jax.ShapeDtypeStruct((n, d), x.dtype),
        grid_spec=pltpu.PrefetchScalarGridSpec(
            num_scalar_prefetch=0,
            grid=grid,
            in_specs=[pl.BlockSpec((tile_n, d), lambda i: (i, 0))],
            out_specs=pl.BlockSpec((tile_n, d), lambda i: (i, 0)),
        ),
        compiler_params=pltpu.CompilerParams(
            dimension_semantics=("parallel",),
            vmem_limit_bytes=vmem_limit,
        ),
    )(x)


if __name__ == "__main__":
    key = jax.random.PRNGKey(0)
    k1, k2, k3 = jax.random.split(key, 3)

    # Feature batch (N, D); N deliberately NOT a multiple of the row tile so the
    # masked partial tail block (no pad / slice round-trips) is exercised.
    n, d = 100, 128
    x = jax.random.normal(k1, (n, d), dtype=jnp.float32)
    out = jax.block_until_ready(normalize(x, power=2))
    ref = x / jnp.sqrt(jnp.sum(x * x, axis=1, keepdims=True))
    assert out.shape == x.shape and out.dtype == x.dtype
    assert jnp.allclose(out, ref, atol=1e-5, rtol=1e-5)

    # bf16 path: scale applied in f32 with a single final cast -> tight tolerance.
    xb = jax.random.normal(k2, (64, 128), dtype=jnp.bfloat16)
    outb = jax.block_until_ready(normalize(xb, power=2))
    xb32 = xb.astype(jnp.float32)
    refb = xb32 / jnp.sqrt(jnp.sum(xb32 * xb32, axis=1, keepdims=True))
    assert outb.shape == xb.shape and outb.dtype == xb.dtype
    assert jnp.allclose(outb.astype(jnp.float32), refb, atol=1e-2, rtol=1e-2)

    # Generic power path (power=4): repeated-multiply pow + per-row inverse norm.
    xp = jax.random.normal(k3, (48, 128), dtype=jnp.float32)
    outp = jax.block_until_ready(normalize(xp, power=4))
    normp = jnp.power(jnp.sum(jnp.power(xp, 4.0), axis=1, keepdims=True), 0.25)
    refp = xp / normp
    assert outp.shape == xp.shape and outp.dtype == xp.dtype
    assert jnp.allclose(outp, refp, atol=1e-4, rtol=1e-4)

    print("KERNEL_OK")
</pallas_src>

<mosaic_0001>
module attributes {stable_mosaic.version = 11 : i64} {
  func.func @_normalize_p2_kernel(%arg0: i32, %arg1: memref<56x128xf32, #tpu.memory_space<vmem>>, %arg2: memref<56x128xf32, #tpu.memory_space<vmem>>) attributes {dimension_semantics = [#tpu.dimension_semantics<parallel>], iteration_bounds = array<i64: 2>, scalar_prefetch = 0 : i64, scratch_operands = 0 : i64, tpu.core_type = #tpu.core_type<tc>, window_params = [{transform_indices = @transform_0, window_bounds = array<i64: 56, 128>}, {transform_indices = @transform_1, window_bounds = array<i64: 56, 128>}]} {
    %c0 = arith.constant 0 : index
    %c0_0 = arith.constant 0 : index
    %0 = vector.load %arg1[%c0, %c0_0] : memref<56x128xf32, #tpu.memory_space<vmem>>, vector<56x128xf32>
    %1 = arith.mulf %0, %0 : vector<56x128xf32>
    %cst = arith.constant dense<0.000000e+00> : vector<56xf32>
    %2 = vector.multi_reduction <add>, %1, %cst [1] : vector<56x128xf32> to vector<56xf32>
    %3 = vector.shape_cast %2 : vector<56xf32> to vector<56x1xf32>
    %4 = math.rsqrt %3 : vector<56x1xf32>
    %5 = vector.broadcast %4 : vector<56x1xf32> to vector<56x128xf32>
    %6 = arith.mulf %0, %5 : vector<56x128xf32>
    %c0_1 = arith.constant 0 : index
    %c0_2 = arith.constant 0 : index
    %7 = vector.load %arg2[%c0_1, %c0_2] : memref<56x128xf32, #tpu.memory_space<vmem>>, vector<56x128xf32>
    tpu.vector_store %arg2[%c0_1, %c0_2], %6 {strides = array<i32>} : memref<56x128xf32, #tpu.memory_space<vmem>>, vector<56x128xf32>,
    return
  }
  func.func @transform_0(%arg0: i32) -> (i32, i32) {
    %c0_i32 = arith.constant 0 : i32
    %c0_i32_0 = arith.constant 0 : i32
    return %arg0, %c0_i32 : i32, i32
  }
  func.func @transform_1(%arg0: i32) -> (i32, i32) {
    %c0_i32 = arith.constant 0 : i32
    %c0_i32_0 = arith.constant 0 : i32
    return %arg0, %c0_i32 : i32, i32
  }
}

</mosaic_0001>

<bundles_post_ra>
// kernel: tpu_custom_call.1
= control target key start
LH: loop header
LB: loop body
LE: loop exit
PB: predicated region body
PF: predicated region fallthrough
CT: control target
= control target key end

     0   :  { %6 = vsyncpa [#allocation3], 0  ;;  %s666_s0 = inlined_call_operand.hbm [shape: f32[100,128], index: 0, kind: input, shape index: {}]   ;;  %s667_s1 = inlined_call_operand.hbm [shape: f32[100,128], index: 1, kind: output, shape index: {}]  }
   0x1   :  { %8 = vsyncpa [#allocation3 + $0x1], 0 }
   0x2   :  { %9 = vsyncpa [#allocation4], 0 }
   0x3   :  { %11 = vsyncpa [#allocation4 + $0x1], 0  ;;  %s482_s6 = smov 0   ;;  %s484_s7 = smov 0  }
   0x4   :  { %s486_s8 = smov 0   ;;  %s488_s9 = smov 0  }
   0x5 LB: > { %s503_s10 = sadd.s32 4294967295, %s464_s9   ;;  %s293_s11 = sadd.s32 4294967294, %s464_s9   ;;  %s464_s9 = sphi %s488_s9, %s677_s9   ;;  %s460_s8 = sphi %s486_s8, %s676_s8   ;;  %s456_s7 = sphi %s484_s7, %s675_s7   ;;  %s452_s6 = sphi %s482_s6, %s674_s6  }
   0x6   : > { %s507_s12 = sadd.s32 1, %s464_s9   ;;  %s24_s13 = sadd.s32 1, %s460_s8 }
   0x7   : > { %s21_s14 = ssub.s32 %s464_s9, %s507_s12  ;;  %p31_p0 = scmp.ne.s32.totalorder %s460_s8, %s456_s7 }
   0x8   : > { %p22_p1 = scmp.eq.s32.totalorder %s21_s14, 0  ;;  %p32_p2 = scmp.eq.s32.totalorder %s464_s9, 0 }
   0x9   : > { %p37_p3 = scmp.ne.s32.totalorder %s456_s7, %s452_s6  ;;  %p38_p4 = scmp.eq.s32.totalorder %s503_s10, 0 }
   0xa   : > { %s519_s15 = scalar_select %p22_p1, %s460_s8, %s24_s13  }
   0xb   : > { %p33_p5 = por %p32_p2, %p31_p0  ;;  %p521_p6 = por %p38_p4, %p37_p3 }
   0xc   : > { %p61_p7 = scmp.eq.s32.totalorder %s503_s10, 1  ;;  %p67_p8 = scmp.eq.s32.totalorder %s293_s11, 1 }
   0xd   : > { %p668_p11 = scmp.ge.s32.totalorder %s464_s9, 2 }
   0xe   : > { %p526_p9 = por %p61_p7, %p31_p0  ;;  %p530_p10 = por %p67_p8, %p37_p3 }
   0xf   : > { %83 = sbr.rel (%p668_p11) target bundleno = 57 (0x39), region = 16 }
  0x10   : > { %s671_s18 = scalar_select %p530_p10, 1, 0 }
  0x16   : > { %86 = sbr.rel (!%p33_p5) target bundleno = 57 (0x39), region = 20  ;;  %s87_s19 = sand.u32 (%p33_p5), 1, %s460_s8  }
  0x17   : > { %s92_s20 = smul.u32 (%p33_p5), 7, %s464_s9  ;;  %s542_s25 = scalar_lea.sflag (%p33_p5), [#allocation3], %s87_s19 }
  0x18   : > { %s311_s21 = smul.u32 (%p33_p5), 56, %s87_s19 }
  0x19   : > { %s93_s22 = ssub.s32 (%p33_p5), 13, %s92_s20 }
  0x1a   : > { %p94_p12 = scmp.lt.s32.totalorder (%p33_p5), %s93_s22, 7  ;;  %s91_s26 = scalar_lea.vmem (%p33_p5), [#allocation2], %s311_s21 }
  0x1d   : > { %s679_s22 = smov (!%p94_p12, %s93_s22), 7 }
  0x1e   : > { %s539_s23 = sshll.u32 %s679_s22, 7 }
  0x1f   : > { %s98_s24 = ssub.s32 896, %s539_s23 }
  0x20   : > { %99 = vsyncadd %s542_s25, %s98_s24  ;;  %p297_p13 = scmp.ne.s32.totalorder %s539_s23, 0  ;;  %s309_s27 = smul.u32 896, %s464_s9 }
  0x21   : > { %s104_s28 = sshll.u32 %s91_s26, 4  ;;  %s374_s11 = scalar_lea.hbm %s666_s0, 1664  ;;  %s552_s28 = int_to_ptr.vmem [resolvable:$true] %s104_s28 }
  0x22   : > { %s550_s2 = scalar_lea.hbm %s666_s0, %s309_s27 }
  0x23   : > { %s370_s3 = scalar_lea.hbm %s550_s2, %s539_s23  ;;  %p375_p3 = scmp.lt.u32.totalorder %s550_s2, %s666_s0 }
  0x24   : > { %p371_p0 = scmp.ne.s32.totalorder %s550_s2, %s370_s3  ;;  %p376_p4 = scmp.lt.u32.totalorder %s374_s11, %s370_s3 }
  0x25   : > { %p378_p7 = scmp.lt.u32.totalorder %s370_s3, %s550_s2 }
  0x26   : > { %p372_p1 = pnand %p371_p0, %p297_p13  ;;  %p377_p5 = por %p376_p4, %p375_p3 }
  0x28   : > { %p373_p2 = pneg %p372_p1  ;;  %p379_p8 = por %p378_p7, %p377_p5 }
  0x2a   : > { %p380_p12 = pnand %p379_p8, %p373_p2 }
  0x2c   : > { %383 = shalt.err (!%p380_p12)
}
  0x2d   : > { %s384_s19 = scalar_lea.vmem %s552_s28, %s539_s23  ;;  %s466_s20 = smov [#allocation2]  }
  0x2e   : > { %p385_p0 = scmp.ne.s32.totalorder %s552_s28, %s384_s19  ;;  %s388_s21 = sshll.u32 %s466_s20, 4  ;;  %s389_s21 = int_to_ptr.vmem [resolvable:$false] %s388_s21 }
  0x2f   : > { %s390_s22 = scalar_lea.vmem %s389_s21, 1792  ;;  %p391_p10 = scmp.lt.s32.totalorder %s552_s28, %s389_s21 }
  0x30   : > { %p386_p1 = pnand %p385_p0, %p297_p13  ;;  %p392_p3 = scmp.lt.s32.totalorder %s390_s22, %s384_s19 }
  0x32   : > { %p387_p11 = pneg %p386_p1  ;;  %p393_p4 = por %p392_p3, %p391_p10 }
  0x34   : > { %p394_p5 = pnand %p393_p4, %p387_p11 }
  0x36   : > { %397 = shalt.err (!%p394_p5)
}
  0x37   : > { %s467_s24 = smov 128   ;;  %s468_s26 = smov 8  }
  0x38   : > { %110 = dma.hbm_to_vmem [thread:$0]  (%p297_p13), %s550_s2, %s539_s23, %s552_s28, %s542_s25, %s467_s24, %s467_s24, %s468_s26  }
  0x39 PF: > { %p301_p2 = scmp.ge.s32.totalorder %s464_s9, 1  ;;  %p112_p7 = scmp.lt.s32.totalorder %s464_s9, 3 }
  0x3b   : > { %p113_p8 = pnand %p301_p2, %p112_p7 }
  0x3c   : > { %s582_s27 = sand.u32 (!%p113_p8), 1, %s456_s7  }
  0x3d   : > { %116 = sbr.rel (%p113_p8) target bundleno = 268 (0x10c), region = 24  ;;  %s119_s30 = scalar_lea.sflag (!%p113_p8), [#allocation3], %s582_s27 }
  0x3e   : > { %s312_s29 = smul.u32 (!%p113_p8), 56, %s582_s27 }
  0x40   : > { %s122_s3 = scalar_lea.vmem (!%p113_p8), [#allocation2], %s312_s29 }
  0x44   : > { %443 = dma.done.wait (%p521_p6), %s119_s30, 896  }
  0x45   : > { %445 = vsyncadd (%p521_p6), %s119_s30, 4294966400  ;;  %v151_v0 = vld [vmem:[%s122_s3] sm:$0xff]  ;;  %v153_v1 = vld [vmem:[%s122_s3 + $0x10] sm:$0xff]  ;;  %s594_s16 = scalar_lea.vmem [#allocation5], %s312_s29  ;;  %s201_s23 = scalar_lea.sflag [#allocation4], %s582_s27 }
  0x46   : > { %v152_v2 = vld [vmem:[%s122_s3 + $0x8] sm:$0xff]  ;;  %v158_v3 = vmul.f32 %v151_v0, %v151_v0  ;;  %v160_v4 = vmul.f32 %v153_v1, %v153_v1  ;;  %v154_v5 = vld [vmem:[%s122_s3 + $0x18] sm:$0xff]  ;;  %v155_v8 = vld [vmem:[%s122_s3 + $0x20] sm:$0xff]  ;;  %s208_s25 = smul.u32 (%p526_p9), 7, %s503_s10 }
  0x47   : > { %v159_v6 = vmul.f32 %v152_v2, %v152_v2  ;;  %v161_v7 = vmul.f32 %v154_v5, %v154_v5  ;;  %v156_v9 = vld [vmem:[%s122_s3 + $0x28] sm:$0xff]  ;;  %v162_v10 = vmul.f32 %v155_v8, %v155_v8  ;;  %v157_v12 = vld [vmem:[%s122_s3 + $0x30] sm:$0xff] }
  0x48   : > { %165 = vadd.xlane.f32.xlu0 %v158_v3  ;;  %169 = vadd.xlane.f32.xlu1 %v160_v4  ;;  %v163_v11 = vmul.f32 %v156_v9, %v156_v9  ;;  %v164_v13 = vmul.f32 %v157_v12, %v157_v12  ;;  %s209_s28 = ssub.s32 (%p526_p9), 13, %s208_s25 }
  0x49   : > { %p210_p6 = scmp.lt.s32.totalorder (%p526_p9), %s209_s28, 7 }
  0x4c   : > { %167 = vadd.xlane.f32.xlu0 %v159_v6  ;;  %171 = vadd.xlane.f32.xlu1 %v161_v7 }
  0x50   : > { %173 = vadd.xlane.f32.xlu0 %v162_v10  ;;  %175 = vadd.xlane.f32.xlu1 %v163_v11 }
  0x54   : > { %177 = vadd.xlane.f32.xlu0 %v164_v13 }
  0xd5   : > { %v166_v14 = vpop.xlane.xlu0 %165  ;;  %v170_v15 = vpop.xlane.xlu1 %169 }
  0xd6   : > { %356 = vrsqrt.f32 %v166_v14 }
  0xd7   : > { %358 = vrsqrt.f32 %v170_v15 }
  0xd9   : > { %v168_v16 = vpop.xlane.xlu0 %167  ;;  %v172_v17 = vpop.xlane.xlu1 %171 }
  0xda   : > { %360 = vrsqrt.f32 %v168_v16 }
  0xdb   : > { %362 = vrsqrt.f32 %v172_v17 }
  0xdd   : > { %v174_v18 = vpop.xlane.xlu0 %173  ;;  %v176_v19 = vpop.xlane.xlu1 %175 }
  0xde   : > { %364 = vrsqrt.f32 %v174_v18 }
  0xdf   : > { %366 = vrsqrt.f32 %v176_v19 }
  0xe0   : > { %v357_v20 = vpop.eup %356 }
  0xe1   : > { %v359_v21 = vpop.eup %358  ;;  %v186_v22 = vmul.f32 %v357_v20, %v151_v0  ;;  %v178_v23 = vpop.xlane.xlu0 %177 }
  0xe2   : > { %v188_v24 = vmul.f32 %v359_v21, %v153_v1  ;;  %368 = vrsqrt.f32 %v178_v23 }
  0xe3   : > { %193 = vst [vmem:[%s594_s16] sm:$0xff] %v186_v22 }
  0xe4   : > { %v361_v25 = vpop.eup %360  ;;  %195 = vst [vmem:[%s594_s16 + $0x10] sm:$0xff] %v188_v24 }
  0xe5   : > { %v363_v26 = vpop.eup %362  ;;  %v187_v27 = vmul.f32 %v361_v25, %v152_v2 }
  0xe6   : > { %v189_v28 = vmul.f32 %v363_v26, %v154_v5 }
  0xe7   : > { %194 = vst [vmem:[%s594_s16 + $0x8] sm:$0xff] %v187_v27 }
  0xe8   : > { %v365_v29 = vpop.eup %364  ;;  %196 = vst [vmem:[%s594_s16 + $0x18] sm:$0xff] %v189_v28 }
  0xe9   : > { %v367_v30 = vpop.eup %366  ;;  %v190_v31 = vmul.f32 %v365_v29, %v155_v8  ;;  %207 = sbr.rel (!%p526_p9) target bundleno = 268 (0x10c), region = 32 }
  0xea   : > { %v191_v32 = vmul.f32 %v367_v30, %v156_v9 }
  0xeb   : > { %197 = vst [vmem:[%s594_s16 + $0x20] sm:$0xff] %v190_v31 }
  0xec   : > { %v369_v33 = vpop.eup %368  ;;  %198 = vst [vmem:[%s594_s16 + $0x28] sm:$0xff] %v191_v32 }
  0xed   : > { %v192_v34 = vmul.f32 %v369_v33, %v157_v12 }
  0xef   : > { %199 = vst [vmem:[%s594_s16 + $0x30] sm:$0xff] %v192_v34 }
  0xf0   : > { %s681_s28 = smov (!%p210_p6, %s209_s28), 7 }
  0xf1   : > { %s607_s2 = sshll.u32 %s681_s28, 7 }
  0xf2   : > { %s214_s4 = ssub.s32 896, %s607_s2 }
  0xf3   : > { %215 = vsyncadd %s201_s23, %s214_s4  ;;  %p303_p10 = scmp.ne.s32.totalorder %s607_s2, 0  ;;  %s310_s17 = smul.u32 896, %s503_s10 }
  0xf4   : > { %s220_s5 = sshll.u32 %s594_s16, 4  ;;  %s469_s20 = smov [#allocation5]   ;;  %s620_s5 = int_to_ptr.vmem [resolvable:$true] %s220_s5 }
  0xf5   : > { %s618_s14 = scalar_lea.hbm %s667_s1, %s310_s17  ;;  %s398_s19 = scalar_lea.vmem %s620_s5, %s607_s2 }
  0xf6   : > { %p399_p9 = scmp.ne.s32.totalorder %s620_s5, %s398_s19  ;;  %s402_s21 = sshll.u32 %s469_s20, 4  ;;  %s403_s21 = int_to_ptr.vmem [resolvable:$false] %s402_s21 }
  0xf7   : > { %s404_s10 = scalar_lea.vmem %s403_s21, 1792  ;;  %p405_p12 = scmp.lt.s32.totalorder %s620_s5, %s403_s21 }
  0xf8   : > { %p400_p11 = pnand %p399_p9, %p303_p10  ;;  %p406_p0 = scmp.lt.s32.totalorder %s404_s10, %s398_s19 }
  0xfa   : > { %p401_p13 = pneg %p400_p11  ;;  %p407_p1 = por %p406_p0, %p405_p12 }
  0xfc   : > { %p408_p3 = pnand %p407_p1, %p401_p13 }
  0xfe   : > { %411 = shalt.err (!%p408_p3)
}
  0xff   : > { %s412_s22 = scalar_lea.hbm %s618_s14, %s607_s2  ;;  %s416_s29 = scalar_lea.hbm %s667_s1, 1664 }
 0x100   : > { %p413_p4 = scmp.ne.s32.totalorder %s618_s14, %s412_s22  ;;  %p417_p7 = scmp.lt.u32.totalorder %s618_s14, %s667_s1 }
 0x101   : > { %p418_p8 = scmp.lt.u32.totalorder %s416_s29, %s412_s22  ;;  %p420_p9 = scmp.lt.u32.totalorder %s412_s22, %s618_s14 }
 0x102   : > { %p414_p5 = pnand %p413_p4, %p303_p10 }
 0x103   : > { %p419_p6 = por %p418_p8, %p417_p7 }
 0x104   : > { %p415_p2 = pneg %p414_p5 }
 0x105   : > { %p421_p11 = por %p420_p9, %p419_p6 }
 0x107   : > { %p422_p13 = pnand %p421_p11, %p415_p2 }
 0x109   : > { %425 = shalt.err (!%p422_p13)
}
 0x10a   : > { %s470_s16 = smov 128   ;;  %s471_s25 = smov 8  }
 0x10b   : > { %226 = dma.vmem_to_hbm [thread:$0]  (%p303_p10), %s620_s5, %s607_s2, %s618_s14, %s201_s23, %s470_s16, %s470_s16, %s471_s25  }
 0x10c PF: > { %s235_s28 = sand.u32 1, %s452_s6   ;;  %p672_p12 = scmp.ne.s32.totalorder %s671_s18, 0 }
 0x10d   : > { %p673_p0 = scmp.ge.s32.totalorder %s464_s9, 2  ;;  %s236_s4 = scalar_lea.sflag [#allocation4], %s235_s28 }
 0x10f   : > { %p316_p1 = pnand %p673_p0, %p672_p12 }
 0x111   : > { %447 = dma.done.wait (!%p316_p1), %s236_s4, 896  }
 0x112   : > { %449 = vsyncadd (!%p316_p1), %s236_s4, 4294966400  ;;  %p14_p3 = scmp.ge.s32.totalorder %s507_s12, 4   ;;  %s674_s6 = smov %s456_s7 }
 0x113   : > { %s675_s7 = smov %s460_s8  ;;  %s676_s8 = smov %s519_s15 }
 0x114   : > { %s677_s9 = smov %s507_s12  ;;  %16 = sbr.rel (!%p14_p3) target bundleno = 5 (0x5), region = 69 }
 0x11b   :  { %241 = vsyncpa [#allocation3], 1 }
 0x11c   :  { %243 = vsyncpa [#allocation3 + $0x1], 1 }
 0x11d   :  { %244 = vsyncpa [#allocation4], 1 }
 0x11e   :  { %246 = vsyncpa [#allocation4 + $0x1], 1 }

</bundles_post_ra>
